<compile_context>
chip_gen: v6e
topology: v6e:2x2x1
jax: 0.10.0
libtpu: 0.0.40
codegen_flags: <defaults>
</compile_context>

<pallas_src>
import functools

import numpy as np
import jax
import jax.numpy as jnp
from jax.experimental import pallas as pl
from jax.experimental.pallas import tpu as pltpu


@functools.lru_cache(maxsize=None)
def _aa_taps(factor: int, order: int) -> tuple:
    """Same construction as Downsample.__init__: box filter self-convolved
    `order` times, normalized.  Returns K = factor + order*(factor-1) taps."""
    box = np.ones(factor, dtype=np.float64)
    k = np.ones(factor, dtype=np.float64)
    for _ in range(order):
        k = np.convolve(k, box)
    k /= k.sum()
    return tuple(float(t) for t in k)


def _pick_row_tile(nrows: int, per_row_bytes: int, budget: int = 8 << 20) -> int:
    """Largest multiple-of-8 proper divisor of `nrows` whose block fits the
    VMEM budget (keeps >= 2 grid steps when possible so the single 'parallel'
    grid axis can feed both v7x TensorCores).  Falls back to the full row
    count, which is always layout-legal (block dim == full array dim)."""
    for t in (2048, 1024, 512, 256, 128, 64, 32, 16, 8):
        if t < nrows and nrows % t == 0 and t * per_row_bytes <= budget:
            return t
    return nrows


def _downsample_kernel(x_ref, o_ref, *, taps, factor, lout):
    # x_ref: (factor, r_tile, M) polyphase input (phase r lives at x_ref[r]).
    # o_ref: (r_tile, Lout).
    # out[row, t] = sum_k taps[k] * x_pad[row, t*factor + k]
    #             = sum_{k = q*factor + r} taps[k] * x_poly[r, row, t + q]
    acc = None
    for k, w in enumerate(taps):
        q, r = divmod(k, factor)
        # Contiguous lane slice; K is small, so this is a short unrolled
        # chain of f32 VPU multiply-adds.
        term = w * x_ref[r, :, q:q + lout].astype(jnp.float32)
        acc = term if acc is None else acc + term
    o_ref[...] = acc.astype(o_ref.dtype)


@functools.partial(jax.jit, static_argnames=("factor", "order"))
def downsample(x, factor: int = 2, order: int = 2):
    """Pallas equivalent of Downsample(channels=C, factor, order).forward(x)."""
    assert factor > 1, "Downsampling factor must be > 1"
    total_padding = order * (factor - 1)
    assert total_padding % 2 == 0, (
        "Misspecified downsampling parameters: order*(factor-1) must be even")
    pad = total_padding // 2

    N, C, L = x.shape
    taps = _aa_taps(factor, order)
    K = len(taps)
    Lout = (L + 2 * pad - K) // factor + 1
    assert Lout > 0, "Input too short for this factor/order"

    # Polyphase layout (pure layout plumbing, one fused XLA copy):
    # pad/crop so padded length is exactly M*factor with M = Lout + Q - 1,
    # split length into (M, factor), move the phase axis to the front, then
    # merge (N, C) into one row axis (free reshape: axes are adjacent).
    Q = -(-K // factor)            # ceil(K / factor)
    M = Lout + Q - 1
    Lneed = M * factor
    right = Lneed - pad - L
    if right < 0:                  # tail of x never contributes to any output
        x = x[:, :, :L + right]
        right = 0
    x_pad = jnp.pad(x, ((0, 0), (0, 0), (pad, right)))
    x_poly = jnp.transpose(x_pad.reshape(N, C, M, factor), (3, 0, 1, 2))
    x_poly = x_poly.reshape(factor, N * C, M)          # (factor, N*C, M)

    NC = N * C
    itemsize = jnp.dtype(x.dtype).itemsize
    r_tile = _pick_row_tile(NC, (factor * M + Lout) * itemsize)
    block_bytes = (factor * r_tile * M + r_tile * Lout) * itemsize
    vmem_limit = int(min(48 << 20, max(32 << 20, 4 * block_bytes)))  # v7x-safe

    kernel = functools.partial(_downsample_kernel, taps=taps, factor=factor, lout=Lout)

    out = pl.pallas_call(
        kernel,
        out_shape=jax.ShapeDtypeStruct((NC, Lout), x.dtype),
        grid=(NC // r_tile,),
        in_specs=[
            pl.BlockSpec((factor, r_tile, M), lambda i: (0, i, 0)),
        ],
        out_specs=pl.BlockSpec((r_tile, Lout), lambda i: (i, 0)),
        compiler_params=pltpu.CompilerParams(
            dimension_semantics=("parallel",),
            vmem_limit_bytes=vmem_limit,
        ),
    )(x_poly)
    return out.reshape(N, C, Lout)


def downsample_ref(x, factor: int, order: int):
    """Pure-JAX reference (depthwise conv), mirrors F.conv1d(..., groups=C)."""
    N, C, L = x.shape
    pad = order * (factor - 1) // 2
    taps = jnp.asarray(_aa_taps(factor, order), dtype=jnp.float32)
    rhs = jnp.broadcast_to(taps[None, None, :], (C, 1, taps.shape[0]))
    return jax.lax.conv_general_dilated(
        x, rhs,
        window_strides=(factor,),
        padding=[(pad, pad)],
        feature_group_count=C,
        dimension_numbers=("NCH", "OIH", "NCH"),
    )


if __name__ == "__main__":
    key = jax.random.PRNGKey(0)
    configs = [
        # (N, C, L, factor, order) -- all satisfy order*(factor-1) % 2 == 0
        (2, 4, 16, 2, 2),    # typical anti-aliased /2 downsample
        (2, 4, 17, 2, 0),    # box filter (== AvgPool); odd length -> crop path
        (2, 8, 16, 3, 2),    # factor 3
        (4, 16, 128, 2, 4),  # exercises multi-step row tiling (N*C = 64)
    ]
    for idx, (n, c, l, factor, order) in enumerate(configs):
        x = jax.random.normal(jax.random.fold_in(key, idx), (n, c, l), dtype=jnp.float32)
        out = jax.block_until_ready(downsample(x, factor=factor, order=order))
        ref = downsample_ref(x, factor=factor, order=order)
        assert out.shape == ref.shape, (out.shape, ref.shape)
        np.testing.assert_allclose(np.asarray(out), np.asarray(ref), rtol=1e-5, atol=1e-5)
    print("KERNEL_OK")
</pallas_src>

<mosaic_0001>
module attributes {stable_mosaic.version = 11 : i64} {
  func.func @_downsample_kernel(%arg0: i32, %arg1: memref<2x8x9xf32, #tpu.memory_space<vmem>>, %arg2: memref<8x8xf32, #tpu.memory_space<vmem>>) attributes {dimension_semantics = [#tpu.dimension_semantics<parallel>], iteration_bounds = array<i64: 1>, scalar_prefetch = 0 : i64, scratch_operands = 0 : i64, tpu.core_type = #tpu.core_type<tc>, window_params = [{transform_indices = @transform_0, window_bounds = array<i64: 2, 8, 9>}, {transform_indices = @transform_1, window_bounds = array<i64: 8, 8>}]} {
    %c0 = arith.constant 0 : index
    %c0_0 = arith.constant 0 : index
    %c0_1 = arith.constant 0 : index
    %0 = vector.load %arg1[%c0, %c0_0, %c0_1] : memref<2x8x9xf32, #tpu.memory_space<vmem>>, vector<1x8x8xf32>
    %1 = vector.shape_cast %0 : vector<1x8x8xf32> to vector<8x8xf32>
    %cst = arith.constant 1.250000e-01 : f32
    %2 = vector.broadcast %cst : f32 to vector<8x8xf32>
    %3 = arith.mulf %2, %1 : vector<8x8xf32>
    %c1 = arith.constant 1 : index
    %c0_2 = arith.constant 0 : index
    %c0_3 = arith.constant 0 : index
    %4 = vector.load %arg1[%c1, %c0_2, %c0_3] : memref<2x8x9xf32, #tpu.memory_space<vmem>>, vector<1x8x8xf32>
    %5 = vector.shape_cast %4 : vector<1x8x8xf32> to vector<8x8xf32>
    %cst_4 = arith.constant 3.750000e-01 : f32
    %6 = vector.broadcast %cst_4 : f32 to vector<8x8xf32>
    %7 = arith.mulf %6, %5 : vector<8x8xf32>
    %8 = arith.addf %3, %7 : vector<8x8xf32>
    %c0_5 = arith.constant 0 : index
    %c0_6 = arith.constant 0 : index
    %c1_7 = arith.constant 1 : index
    %9 = vector.load %arg1[%c0_5, %c0_6, %c1_7] : memref<2x8x9xf32, #tpu.memory_space<vmem>>, vector<1x8x8xf32>
    %10 = vector.shape_cast %9 : vector<1x8x8xf32> to vector<8x8xf32>
    %cst_8 = arith.constant 3.750000e-01 : f32
    %11 = vector.broadcast %cst_8 : f32 to vector<8x8xf32>
    %12 = arith.mulf %11, %10 : vector<8x8xf32>
    %13 = arith.addf %8, %12 : vector<8x8xf32>
    %c1_9 = arith.constant 1 : index
    %c0_10 = arith.constant 0 : index
    %c1_11 = arith.constant 1 : index
    %14 = vector.load %arg1[%c1_9, %c0_10, %c1_11] : memref<2x8x9xf32, #tpu.memory_space<vmem>>, vector<1x8x8xf32>
    %15 = vector.shape_cast %14 : vector<1x8x8xf32> to vector<8x8xf32>
    %cst_12 = arith.constant 1.250000e-01 : f32
    %16 = vector.broadcast %cst_12 : f32 to vector<8x8xf32>
    %17 = arith.mulf %16, %15 : vector<8x8xf32>
    %18 = arith.addf %13, %17 : vector<8x8xf32>
    %c0_13 = arith.constant 0 : index
    %c0_14 = arith.constant 0 : index
    %19 = vector.load %arg2[%c0_13, %c0_14] : memref<8x8xf32, #tpu.memory_space<vmem>>, vector<8x8xf32>
    tpu.vector_store %arg2[%c0_13, %c0_14], %18 {strides = array<i32>} : memref<8x8xf32, #tpu.memory_space<vmem>>, vector<8x8xf32>,
    return
  }
  func.func @transform_0(%arg0: i32) -> (i32, i32, i32) {
    %c0_i32 = arith.constant 0 : i32
    %c0_i32_0 = arith.constant 0 : i32
    %c0_i32_1 = arith.constant 0 : i32
    return %c0_i32, %arg0, %c0_i32_0 : i32, i32, i32
  }
  func.func @transform_1(%arg0: i32) -> (i32, i32) {
    %c0_i32 = arith.constant 0 : i32
    %c0_i32_0 = arith.constant 0 : i32
    return %arg0, %c0_i32 : i32, i32
  }
}

</mosaic_0001>

<bundles_post_ra>
// kernel: downsample.1
= control target key start
LH: loop header
LB: loop body
LE: loop exit
PB: predicated region body
PF: predicated region fallthrough
CT: control target
= control target key end

     0   :  { %s89_s0 = inlined_call_operand.vmem [shape: f32[2,8,9], index: 0, kind: input, shape index: {}]   ;;  %s90_s1 = inlined_call_operand.hbm [shape: f32[8,8], index: 1, kind: output, shape index: {}]  }
   0x1   :  { %v9_v0 = vld [vmem:[%s89_s0] sm:$0xff]  ;;  %v43_v1 = vld [vmem:[%s89_s0 + $0x8] sm:$0xff] }
   0x2   :  { %6 = vsyncpa [#allocation3], 0  ;;  %v15_v2 = vmul.f32 0.375, %v9_v0  ;;  %v10_v3 = vmul.f32 0.125, %v9_v0  ;;  %v13_v4 = vmul.f32 0.375, %v43_v1  ;;  %s68_s10 = smov 127  }
   0x3   :  { %v21_v5 = vmul.f32 0.125, %v43_v1  ;;  %s69_s11 = smov [#allocation2]   ;;  %vm27_vm0 = vcmask 64512  }
   0x4   :  { %17 = vrot.lane.b32.xlu0 %v15_v2, %s68_s10  ;;  %v14_v6 = vadd.f32 %v13_v4, %v10_v3  ;;  %s35_s12 = sshll.u32 %s69_s11, 4  ;;  %s36_s12 = int_to_ptr.vmem [resolvable:$true] %s35_s12 }
   0x5   :  { %s46_s13 = scalar_lea.vmem %s36_s12, 128  ;;  %p51_p1 = scmp.lt.s32.totalorder %s36_s12, %s36_s12 }
   0x6   :  { %p47_p0 = scmp.ne.s32.totalorder %s36_s12, %s46_s13  ;;  %p52_p2 = scmp.lt.s32.totalorder %s46_s13, %s46_s13 }
   0x8   :  { %23 = vrot.lane.b32.xlu0 %v21_v5, %s68_s10  ;;  %p53_p3 = por %p52_p2, %p51_p1 }
   0xa   :  { %p54_p4 = pnand %p53_p3, %p47_p0 }
  0x76   :  { %v18_v7 = vpop.permute.xlu0 %17 }
  0x77   :  { %v20_v8 = vadd.f32 %v18_v7, %v14_v6 }
  0x7a   :  { %v24_v9 = vpop.permute.xlu0 %23 }
  0x7b   :  { %v26_v10 = vadd.f32 %v24_v9, %v20_v8 }
  0x7d   :  { %28 = vst.msk [vmem:[#allocation2] sm:$0xff] %vm27_vm0, %v26_v10 }
  0x7e   :  { %57 = shalt.err (!%p54_p4)
}
  0x7f   :  { %38 = dma.vmem_to_hbm [thread:$0]  %s36_s12, 128, %s90_s1, [#allocation3]  }
  0x80   :  { %66 = dma.done.wait [#allocation3], 128  }
  0x81   :  { %67 = vsyncadd [#allocation3], 4294967168 }
  0x82   :  { %42 = vsyncpa [#allocation3], 1 }

</bundles_post_ra>
